<compile_context>
chip_gen: v5e
topology: v5e:2x2
jax: 0.10.0
libtpu: 0.0.40
codegen_flags: <defaults>
</compile_context>

<pallas_src>
import jax
import jax.numpy as jnp
from jax.experimental import pallas as pl
from jax.experimental.pallas import tpu as pltpu


# ----------------------------- small helpers ------------------------------ #

def _round_up(v: int, m: int) -> int:
    return -(v // -m) * m


def _cdiv(a: int, b: int) -> int:
    return -(a // -b)


def _pick_tile(extent: int, max_tile: int, align: int) -> int:
    """Largest tile <= max_tile (aligned) with balanced blocks / minimal padding."""
    ext = _round_up(extent, align)
    if ext <= max_tile:
        return ext
    n_tiles = _cdiv(ext, max_tile)
    return _round_up(_cdiv(ext, n_tiles), align)


def _chip_config():
    """Per-generation (tm, tn, tk) ceilings, VMEM tile budget (bytes), #TensorCores."""
    kind = ""
    try:
        kind = jax.devices()[0].device_kind.lower()
    except Exception:  # pragma: no cover - conservative fallback
        pass
    if "v5" in kind:
        # v5e ridge ~ 197 TF/s / 0.82 TB/s ~ 240 flop/B -> 512x512 output tiles.
        return (512, 512, 1024), 80 << 20, 1
    if "v6" in kind or "trillium" in kind:
        # v6e ridge ~ 918 / 1.4 ~ 650 flop/B -> needs ~1K x 2K output tiles.
        return (1024, 2048, 1024), 96 << 20, 1
    if "7" in kind:
        # v7x: only 64 MiB VMEM / TC; ridge ~ 996 / 3.2 ~ 310 flop/B.
        return (512, 2048, 1024), 44 << 20, 2
    # Unknown generation: safe middle ground (fits any VMEM budget).
    return (512, 1024, 1024), 44 << 20, 1


def _fit_to_budget(tm, tn, tk, in_bytes, out_bytes, budget):
    """Shrink tiles (rarely needed) until double-buffered footprint fits the budget."""
    def footprint(a, b, c):
        return (2 * a * c * in_bytes       # x tile, double buffered
                + 2 * c * b * in_bytes     # w tile, double buffered
                + 2 * a * b * out_bytes    # out tile, double buffered
                + a * b * 4)               # f32 accumulator scratch
    while footprint(tm, tn, tk) > budget:
        if tk >= max(tm, tn) and tk > 128:
            tk //= 2
        elif tn >= tm and tn > 128:
            tn //= 2
        elif tm > 8:
            tm //= 2
        else:
            break
    return tm, tn, tk


# -------------------------------- kernels --------------------------------- #

def _linear_kernel(x_ref, w_ref, b_ref, o_ref, acc_ref):
    # x_ref: (tm, tk), w_ref: (tk, tn)  -> plain MXU-native contraction.
    k = pl.program_id(2)
    prod = jnp.dot(x_ref[...], w_ref[...], preferred_element_type=jnp.float32)

    @pl.when(k == 0)
    def _init():                         # fuse init into the first accumulate
        acc_ref[...] = prod

    @pl.when(k > 0)
    def _accum():
        acc_ref[...] += prod

    @pl.when(k == pl.num_programs(2) - 1)
    def _finalize():
        o_ref[...] = (acc_ref[...] + b_ref[...].astype(jnp.float32)).astype(o_ref.dtype)


def _linear_kernel_nobias(x_ref, w_ref, o_ref, acc_ref):
    k = pl.program_id(2)
    prod = jnp.dot(x_ref[...], w_ref[...], preferred_element_type=jnp.float32)

    @pl.when(k == 0)
    def _init():
        acc_ref[...] = prod

    @pl.when(k > 0)
    def _accum():
        acc_ref[...] += prod

    @pl.when(k == pl.num_programs(2) - 1)
    def _finalize():
        o_ref[...] = acc_ref[...].astype(o_ref.dtype)


# -------------------------------- wrapper --------------------------------- #

def prepare_casted_linear_weight(weight, dtype):
    """Pre-cast + pre-transpose a torch-layout [N, K] weight to [K, N] once,
    outside the hot path (then call casted_linear_pallas(..., weight_layout="kn"))."""
    return weight.T.astype(dtype)


def casted_linear_pallas(x, weight, bias=None, *, tm=None, tn=None, tk=None,
                         weight_layout="nk"):
    """y = x @ W.T + bias with W/bias cast to x.dtype (CastedLinear semantics).

    x:      [..., K]
    weight: [N, K] if weight_layout=="nk" (torch nn.Linear layout), or
            [K, N] if weight_layout=="kn" (pre-transposed / pre-cast).
    bias:   [N] or None
    """
    *lead, K = x.shape
    if weight_layout == "nk":
        N, Kw = weight.shape
    elif weight_layout == "kn":
        Kw, N = weight.shape
    else:
        raise ValueError("weight_layout must be 'nk' or 'kn'")
    assert K == Kw, "in_features mismatch"

    x2d = x.reshape(-1, K)
    M = x2d.shape[0]

    in_bytes = jnp.dtype(x.dtype).itemsize
    out_bytes = in_bytes

    (tm_max, tn_max, tk_max), budget, n_cores = _chip_config()
    if tm is not None:
        tm_max = tm
    if tn is not None:
        tn_max = tn
    if tk is not None:
        tk_max = tk
    tm_max, tn_max, tk_max = _fit_to_budget(tm_max, tn_max, tk_max,
                                            in_bytes, out_bytes, budget)

    # M tiles aligned to the packed sublane granularity of the dtype.
    m_align = {4: 8, 2: 16, 1: 32}.get(in_bytes, 8)
    tm_eff = _pick_tile(M, tm_max, m_align)
    Mp = _round_up(M, tm_eff)

    tn_eff = _pick_tile(N, tn_max, 128)
    if n_cores >= 2 and Mp // tm_eff == 1:
        # Decode-shaped call on a 2-TC chip: make sure a parallel axis has >=2
        # blocks so both TensorCores get work.
        n128 = _round_up(N, 128)
        if n128 // tn_eff < 2 and n128 >= 256:
            tn_eff = _round_up(_cdiv(n128, 2), 128)
    Np = _round_up(N, tn_eff)

    tk_eff = _pick_tile(K, tk_max, 128)
    Kp = _round_up(K, tk_eff)

    # CastedLinear: parameters follow the activation dtype.  The [N,K]->[K,N]
    # transpose is folded into this (already required) cast copy so the kernel
    # never emits an in-kernel weight transpose.
    if weight_layout == "nk":
        w = weight.T.astype(x.dtype)
    else:
        w = weight.astype(x.dtype)
    # TODO(synk): for weight-bandwidth-bound decode, cache the cast/transposed
    # (and padded) weight across calls via prepare_casted_linear_weight.

    if (Mp, Kp) != (M, K):
        x2d = jnp.pad(x2d, ((0, Mp - M), (0, Kp - K)))
    if (Kp, Np) != (K, N):
        w = jnp.pad(w, ((0, Kp - K), (0, Np - N)))

    grid = (Mp // tm_eff, Np // tn_eff, Kp // tk_eff)

    footprint = (2 * tm_eff * tk_eff * in_bytes
                 + 2 * tk_eff * tn_eff * in_bytes
                 + 2 * tm_eff * tn_eff * out_bytes
                 + tm_eff * tn_eff * 4
                 + 2 * tn_eff * in_bytes)
    vmem_limit = int(max(32 << 20, footprint + (2 << 20)))

    cost = pl.CostEstimate(
        flops=2 * M * N * K,
        transcendentals=0,
        bytes_accessed=(M * K + N * K) * in_bytes + M * N * out_bytes
        + (N * in_bytes if bias is not None else 0),
    )

    x_spec = pl.BlockSpec((tm_eff, tk_eff), lambda i, j, k: (i, k))
    w_spec = pl.BlockSpec((tk_eff, tn_eff), lambda i, j, k: (k, j))
    o_spec = pl.BlockSpec((tm_eff, tn_eff), lambda i, j, k: (i, j))
    compiler_params = pltpu.CompilerParams(
        dimension_semantics=("parallel", "parallel", "arbitrary"),
        vmem_limit_bytes=vmem_limit,
    )
    scratch = [pltpu.VMEM((tm_eff, tn_eff), jnp.float32)]

    if bias is not None:
        b2d = jnp.pad(bias.astype(x.dtype), (0, Np - N)).reshape(1, Np)
        out_p = pl.pallas_call(
            _linear_kernel,
            out_shape=jax.ShapeDtypeStruct((Mp, Np), x.dtype),
            grid_spec=pltpu.PrefetchScalarGridSpec(
                num_scalar_prefetch=0,
                grid=grid,
                in_specs=[x_spec, w_spec,
                          pl.BlockSpec((1, tn_eff), lambda i, j, k: (0, j))],
                out_specs=o_spec,
                scratch_shapes=scratch,
            ),
            compiler_params=compiler_params,
            cost_estimate=cost,
        )(x2d, w, b2d)
    else:
        out_p = pl.pallas_call(
            _linear_kernel_nobias,
            out_shape=jax.ShapeDtypeStruct((Mp, Np), x.dtype),
            grid_spec=pltpu.PrefetchScalarGridSpec(
                num_scalar_prefetch=0,
                grid=grid,
                in_specs=[x_spec, w_spec],
                out_specs=o_spec,
                scratch_shapes=scratch,
            ),
            compiler_params=compiler_params,
            cost_estimate=cost,
        )(x2d, w)

    out = out_p[:M, :N]
    return out.reshape(*lead, N)


# ------------------------------- reference -------------------------------- #

def casted_linear_reference(x, weight, bias=None):
    w = weight.astype(x.dtype).astype(jnp.float32)
    y = jnp.einsum("...k,nk->...n", x.astype(jnp.float32), w)
    if bias is not None:
        y = y + bias.astype(x.dtype).astype(jnp.float32)
    return y.astype(x.dtype)


# ---------------------------------- test ----------------------------------- #

if __name__ == "__main__":
    key = jax.random.PRNGKey(0)
    kx, kw, kb, kx2, kw2, kb2, kx3 = jax.random.split(key, 7)

    # --- small CastedLinear-like shapes: [B, S, in] @ [out, in].T + bias ---
    batch, seq, in_features, out_features = 2, 8, 32, 64
    weight = (jax.random.normal(kw, (out_features, in_features), jnp.float32)
              * (1.0 / in_features ** 0.5))
    bias = jax.random.normal(kb, (out_features,), jnp.float32) * 0.02
    x = jax.random.normal(kx, (batch, seq, in_features), jnp.float32)

    out = jax.block_until_ready(casted_linear_pallas(x, weight, bias))
    ref = casted_linear_reference(x, weight, bias)
    assert out.shape == (batch, seq, out_features)
    assert jnp.allclose(out, ref, atol=1e-4, rtol=1e-4), "mismatch vs reference (bias)"

    # --- bias=None path (dedicated kernel, no zeros DMA) ---
    out_nb = jax.block_until_ready(casted_linear_pallas(x, weight, None))
    ref_nb = casted_linear_reference(x, weight, None)
    assert jnp.allclose(out_nb, ref_nb, atol=1e-4, rtol=1e-4), "mismatch (no bias)"

    # --- multi-tile grid (M, N, K all > one tile) with explicit small tiles ---
    in2, out2 = 256, 384
    w2 = jax.random.normal(kw2, (out2, in2), jnp.float32) * (1.0 / in2 ** 0.5)
    b2 = jax.random.normal(kb2, (out2,), jnp.float32) * 0.02
    x2 = jax.random.normal(kx2, (2, 128, in2), jnp.float32)
    out2_p = jax.block_until_ready(
        casted_linear_pallas(x2, w2, b2, tm=128, tn=128, tk=128))
    ref2 = casted_linear_reference(x2, w2, b2)
    assert jnp.allclose(out2_p, ref2, atol=1e-3, rtol=1e-3), "mismatch on tiled grid"

    # --- decode-shaped call (tiny M) with a pre-cast / pre-transposed weight ---
    x3 = jax.random.normal(kx3, (1, 2, in2), jnp.float32)
    w2_kn = prepare_casted_linear_weight(w2, x3.dtype)
    out3 = jax.block_until_ready(
        casted_linear_pallas(x3, w2_kn, b2, weight_layout="kn"))
    ref3 = casted_linear_reference(x3, w2, b2)
    assert jnp.allclose(out3, ref3, atol=1e-3, rtol=1e-3), "mismatch (decode/kn)"

    # --- casting semantics: bf16 input -> params cast to bf16, bf16 output ---
    x_bf16 = x.astype(jnp.bfloat16)
    out_bf16 = jax.block_until_ready(casted_linear_pallas(x_bf16, weight, bias))
    assert out_bf16.dtype == jnp.bfloat16
    ref_bf16 = casted_linear_reference(x_bf16, weight, bias)
    assert jnp.allclose(out_bf16.astype(jnp.float32), ref_bf16.astype(jnp.float32),
                        atol=1e-1, rtol=1e-1), "mismatch vs reference (bf16)"

    print("KERNEL_OK")
</pallas_src>

<mosaic_0001>
module attributes {stable_mosaic.version = 11 : i64} {
  func.func @_linear_kernel(%arg0: i32, %arg1: i32, %arg2: i32, %arg3: memref<16x128xf32, #tpu.memory_space<vmem>>, %arg4: memref<128x128xf32, #tpu.memory_space<vmem>>, %arg5: memref<1x128xf32, #tpu.memory_space<vmem>>, %arg6: memref<16x128xf32, #tpu.memory_space<vmem>>, %arg7: memref<16x128xf32, #tpu.memory_space<vmem>>) attributes {dimension_semantics = [#tpu.dimension_semantics<parallel>, #tpu.dimension_semantics<parallel>, #tpu.dimension_semantics<arbitrary>], iteration_bounds = array<i64: 1, 1, 1>, scalar_prefetch = 0 : i64, scratch_operands = 1 : i64, tpu.core_type = #tpu.core_type<tc>, window_params = [{transform_indices = @transform_0, window_bounds = array<i64: 16, 128>}, {transform_indices = @transform_1, window_bounds = array<i64: 128, 128>}, {transform_indices = @transform_2, window_bounds = array<i64: 1, 128>}, {transform_indices = @transform_3, window_bounds = array<i64: 16, 128>}]} {
    %c0 = arith.constant 0 : index
    %c0_0 = arith.constant 0 : index
    %0 = vector.load %arg3[%c0, %c0_0] : memref<16x128xf32, #tpu.memory_space<vmem>>, vector<16x128xf32>
    %c0_1 = arith.constant 0 : index
    %c0_2 = arith.constant 0 : index
    %1 = vector.load %arg4[%c0_1, %c0_2] : memref<128x128xf32, #tpu.memory_space<vmem>>, vector<128x128xf32>
    %cst = arith.constant dense<0.000000e+00> : vector<16x128xf32>
    %2 = tpu.matmul %0, %1, %cst {dimension_numbers = #tpu.dot_dimension_numbers<[1], [0], [0], [1], [0, 0, 1, 1], [], []>} : vector<16x128xf32>, vector<128x128xf32>, vector<16x128xf32> -> vector<16x128xf32>
    %c0_i32 = arith.constant 0 : i32
    %3 = arith.cmpi eq, %arg2, %c0_i32 : i32
    %4 = arith.extui %3 : i1 to i32
    %c0_i32_3 = arith.constant 0 : i32
    %5 = arith.cmpi ne, %4, %c0_i32_3 : i32
    scf.if %5 {
      %c0_8 = arith.constant 0 : index
      %c0_9 = arith.constant 0 : index
      %12 = vector.load %arg7[%c0_8, %c0_9] : memref<16x128xf32, #tpu.memory_space<vmem>>, vector<16x128xf32>
      tpu.vector_store %arg7[%c0_8, %c0_9], %2 {strides = array<i32>} : memref<16x128xf32, #tpu.memory_space<vmem>>, vector<16x128xf32>,
    } else {
    }
    %c0_i32_4 = arith.constant 0 : i32
    %6 = arith.cmpi sgt, %arg2, %c0_i32_4 : i32
    %7 = arith.extui %6 : i1 to i32
    %c0_i32_5 = arith.constant 0 : i32
    %8 = arith.cmpi ne, %7, %c0_i32_5 : i32
    scf.if %8 {
      %c0_8 = arith.constant 0 : index
      %c0_9 = arith.constant 0 : index
      %12 = vector.load %arg7[%c0_8, %c0_9] : memref<16x128xf32, #tpu.memory_space<vmem>>, vector<16x128xf32>
      %13 = arith.addf %12, %2 : vector<16x128xf32>
      %c0_10 = arith.constant 0 : index
      %c0_11 = arith.constant 0 : index
      %14 = vector.load %arg7[%c0_10, %c0_11] : memref<16x128xf32, #tpu.memory_space<vmem>>, vector<16x128xf32>
      tpu.vector_store %arg7[%c0_10, %c0_11], %13 {strides = array<i32>} : memref<16x128xf32, #tpu.memory_space<vmem>>, vector<16x128xf32>,
    } else {
    }
    %c0_i32_6 = arith.constant 0 : i32
    %9 = arith.cmpi eq, %arg2, %c0_i32_6 : i32
    %10 = arith.extui %9 : i1 to i32
    %c0_i32_7 = arith.constant 0 : i32
    %11 = arith.cmpi ne, %10, %c0_i32_7 : i32
    scf.if %11 {
      %c0_8 = arith.constant 0 : index
      %c0_9 = arith.constant 0 : index
      %12 = vector.load %arg7[%c0_8, %c0_9] : memref<16x128xf32, #tpu.memory_space<vmem>>, vector<16x128xf32>
      %c0_10 = arith.constant 0 : index
      %c0_11 = arith.constant 0 : index
      %13 = vector.load %arg5[%c0_10, %c0_11] : memref<1x128xf32, #tpu.memory_space<vmem>>, vector<1x128xf32>
      %14 = vector.broadcast %13 : vector<1x128xf32> to vector<16x128xf32>
      %15 = arith.addf %12, %14 : vector<16x128xf32>
      %c0_12 = arith.constant 0 : index
      %c0_13 = arith.constant 0 : index
      %16 = vector.load %arg6[%c0_12, %c0_13] : memref<16x128xf32, #tpu.memory_space<vmem>>, vector<16x128xf32>
      tpu.vector_store %arg6[%c0_12, %c0_13], %15 {strides = array<i32>} : memref<16x128xf32, #tpu.memory_space<vmem>>, vector<16x128xf32>,
    } else {
    }
    return
  }
  func.func @transform_0(%arg0: i32, %arg1: i32, %arg2: i32) -> (i32, i32) {
    %c0_i32 = arith.constant 0 : i32
    return %arg0, %arg2 : i32, i32
  }
  func.func @transform_1(%arg0: i32, %arg1: i32, %arg2: i32) -> (i32, i32) {
    %c0_i32 = arith.constant 0 : i32
    return %arg2, %arg1 : i32, i32
  }
  func.func @transform_2(%arg0: i32, %arg1: i32, %arg2: i32) -> (i32, i32) {
    %c0_i32 = arith.constant 0 : i32
    %c0_i32_0 = arith.constant 0 : i32
    return %c0_i32, %arg1 : i32, i32
  }
  func.func @transform_3(%arg0: i32, %arg1: i32, %arg2: i32) -> (i32, i32) {
    %c0_i32 = arith.constant 0 : i32
    return %arg0, %arg1 : i32, i32
  }
}

</mosaic_0001>

<bundles_post_ra>
// kernel: tpu_custom_call.1
= control target key start
LH: loop header
LB: loop body
LE: loop exit
PB: predicated region body
PF: predicated region fallthrough
CT: control target
= control target key end

     0   :  { %8 = vsyncpa [#allocation4], 0  ;;  %s283_s0 = inlined_call_operand.hbm [shape: f32[16,128], index: 0, kind: input, shape index: {}]   ;;  %s284_s1 = inlined_call_operand.hbm [shape: f32[128,128], index: 1, kind: input, shape index: {}]   ;;  %s285_s2 = inlined_call_operand.vmem [shape: f32[1,128], index: 2, kind: input, shape index: {}]   ;;  %s286_s3 = inlined_call_operand.hbm [shape: f32[16,128], index: 3, kind: output, shape index: {}]  }
   0x1   :  { %9 = vsyncpa [#allocation7], 0 }
   0x2   :  { %10 = vsyncpa [#allocation5], 0  ;;  %s15_s14 = sshll.u32 %s283_s0, 4  ;;  %s237_s15 = smov [#allocation3]   ;;  %s16_s14 = int_to_ptr.hbm [resolvable:$true] %s15_s14 }
   0x3   :  { %s17_s16 = sshll.u32 %s237_s15, 4  ;;  %s28_s19 = sshll.u32 %s284_s1, 4  ;;  %s18_s16 = int_to_ptr.vmem [resolvable:$true] %s17_s16  ;;  %s29_s19 = int_to_ptr.hbm [resolvable:$true] %s28_s19 }
   0x4   :  { %s238_s20 = smov 128   ;;  %s239_s21 = smov 8  }
   0x5   :  { %23 = dma.hbm_to_vmem [thread:$0]  %s16_s14, 256, %s18_s16, [#allocation4], %s238_s20, %s238_s20, %s239_s21  }
   0x6   :  { %s240_s22 = smov [#allocation6]  }
   0x7   :  { %s30_s23 = sshll.u32 %s240_s22, 4  ;;  %s31_s23 = int_to_ptr.vmem [resolvable:$true] %s30_s23 }
   0x8   :  { %36 = dma.hbm_to_vmem [thread:$0]  %s29_s19, 2048, %s31_s23, [#allocation7], %s238_s20, %s238_s20, %s239_s21  }
   0x9   :  { %231 = dma.done.wait [#allocation4], 256  }
   0xa   :  { %232 = vsyncadd [#allocation4], 4294967040 }
   0xb   :  { %233 = dma.done.wait [#allocation7], 2048  }
   0xc   :  { %234 = vsyncadd [#allocation7], 4294965248  ;;  %v64_v0 = vld [vmem:[#allocation6 + $0x78] sm:$0xff]  ;;  %v63_v1 = vld [vmem:[#allocation6 + $0x70] sm:$0xff]  ;;  %s241_s24 = smov [#allocation8]   ;;  %s123_s28 = sshll.u32 %s286_s3, 4  ;;  %s124_s28 = int_to_ptr.hbm [resolvable:$true] %s123_s28 }
   0xd   :  { %65 = vmatpush.msra.mxu0 %v64_v0  ;;  %137 = vmatpush.msra.mxu1 %v64_v0  ;;  %v62_v2 = vld [vmem:[#allocation6 + $0x68] sm:$0xff]  ;;  %v61_v3 = vld [vmem:[#allocation6 + $0x60] sm:$0xff]  ;;  %v60_v4 = vld [vmem:[#allocation6 + $0x58] sm:$0xff]  ;;  %s121_s25 = sshll.u32 %s241_s24, 4  ;;  %s122_s25 = int_to_ptr.vmem [resolvable:$true] %s121_s25 }
   0xe   :  { %v59_v5 = vld [vmem:[#allocation6 + $0x50] sm:$0xff]  ;;  %v58_v6 = vld [vmem:[#allocation6 + $0x48] sm:$0xff]  ;;  %v57_v7 = vld [vmem:[#allocation6 + $0x40] sm:$0xff] }
   0xf   :  { %66 = vmatpush.msra.mxu0 %v63_v1  ;;  %138 = vmatpush.msra.mxu1 %v63_v1  ;;  %v56_v8 = vld [vmem:[#allocation6 + $0x38] sm:$0xff]  ;;  %v55_v9 = vld [vmem:[#allocation6 + $0x30] sm:$0xff]  ;;  %v54_v10 = vld [vmem:[#allocation6 + $0x28] sm:$0xff] }
  0x10   :  { %v53_v11 = vld [vmem:[#allocation6 + $0x20] sm:$0xff]  ;;  %v52_v12 = vld [vmem:[#allocation6 + $0x18] sm:$0xff]  ;;  %v51_v13 = vld [vmem:[#allocation6 + $0x10] sm:$0xff] }
  0x11   :  { %67 = vmatpush.msra.mxu0 %v62_v2  ;;  %139 = vmatpush.msra.mxu1 %v62_v2  ;;  %v50_v14 = vld [vmem:[#allocation6 + $0x8] sm:$0xff]  ;;  %v49_v15 = vld [vmem:[#allocation6] sm:$0xff]  ;;  %v47_v16 = vld [vmem:[#allocation3] sm:$0xff] }
  0x12   :  { %v48_v17 = vld [vmem:[#allocation3 + $0x8] sm:$0xff]  ;;  %v158_v18 = vld [vmem:[%s285_s2] ss:$0 sm:$0xff] }
  0x13   :  { %68 = vmatpush.msra.mxu0 %v61_v3  ;;  %140 = vmatpush.msra.mxu1 %v61_v3 }
  0x15   :  { %69 = vmatpush.msra.mxu0 %v60_v4  ;;  %141 = vmatpush.msra.mxu1 %v60_v4 }
  0x17   :  { %70 = vmatpush.msra.mxu0 %v59_v5  ;;  %142 = vmatpush.msra.mxu1 %v59_v5 }
  0x19   :  { %71 = vmatpush.msra.mxu0 %v58_v6  ;;  %143 = vmatpush.msra.mxu1 %v58_v6 }
  0x1b   :  { %72 = vmatpush.msra.mxu0 %v57_v7  ;;  %144 = vmatpush.msra.mxu1 %v57_v7 }
  0x1d   :  { %73 = vmatpush.msra.mxu0 %v56_v8  ;;  %145 = vmatpush.msra.mxu1 %v56_v8 }
  0x1f   :  { %74 = vmatpush.msra.mxu0 %v55_v9  ;;  %146 = vmatpush.msra.mxu1 %v55_v9 }
  0x21   :  { %75 = vmatpush.msra.mxu0 %v54_v10  ;;  %147 = vmatpush.msra.mxu1 %v54_v10 }
  0x23   :  { %76 = vmatpush.msra.mxu0 %v53_v11  ;;  %148 = vmatpush.msra.mxu1 %v53_v11 }
  0x25   :  { %77 = vmatpush.msra.mxu0 %v52_v12  ;;  %149 = vmatpush.msra.mxu1 %v52_v12 }
  0x27   :  { %78 = vmatpush.msra.mxu0 %v51_v13  ;;  %150 = vmatpush.msra.mxu1 %v51_v13 }
  0x29   :  { %79 = vmatpush.msra.mxu0 %v50_v14  ;;  %151 = vmatpush.msra.mxu1 %v50_v14 }
  0x2b   :  { %80 = vmatpush.msra.mxu0 %v49_v15  ;;  %152 = vmatpush.msra.mxu1 %v49_v15 }
  0x2c   :  { %81 = vmatmul.f32.vlgmr.msra.gmra.mxu0 %v47_v16  ;;  %84 = vmatmul.f32.vlgmr.msra.gmra.mxu1 %v48_v17 }
  0xa9   :  { %v82_v19 = vpop.f32.mrf.mxu0  ;;  %v85_v20 = vpop.f32.mrf.mxu1 }
  0xaa   :  { %v113_v21 = vadd.f32 %v158_v18, %v82_v19  ;;  %v114_v22 = vadd.f32 %v158_v18, %v85_v20 }
  0xac   :  { %115 = vst [vmem:[#allocation8] sm:$0xff] %v113_v21 }
  0xad   :  { %116 = vst [vmem:[#allocation8 + $0x8] sm:$0xff] %v114_v22 }
  0xae   :  { %129 = dma.vmem_to_hbm [thread:$0]  %s122_s25, 256, %s124_s28, [#allocation5], %s238_s20, %s238_s20, %s239_s21  }
  0xaf   :  { %235 = dma.done.wait [#allocation5], 256  }
  0xb0   :  { %236 = vsyncadd [#allocation5], 4294967040 }
  0xb1   :  { %134 = vsyncpa [#allocation4], 1 }
  0xb2   :  { %135 = vsyncpa [#allocation7], 1 }
  0xb3   :  { %136 = vsyncpa [#allocation5], 1 }

</bundles_post_ra>
